<compile_context>
chip_gen: v5e
topology: v5e:2x2
jax: 0.10.0
libtpu: 0.0.40
codegen_flags: <defaults>
</compile_context>

<pallas_src>
import functools

import jax
import jax.numpy as jnp
from jax import lax
from jax.experimental import pallas as pl
from jax.experimental.pallas import tpu as pltpu

_NEG_FILL = -100000000.0   # torch masked_fill value (-1e8), exactly representable in f32


def _round_up(x, m):
    return ((x + m - 1) // m) * m


def _is_small_vmem_part():
    """True for v7x-like parts (64 MiB VMEM per TensorCore, 2 TCs)."""
    try:
        kind = jax.devices()[0].device_kind.lower()
    except Exception:
        kind = ""
    if "v7" in kind:
        return True
    if "v4" in kind or "v5" in kind or "v6" in kind:
        return False
    try:
        cap = int(getattr(pltpu.get_tpu_info(), "vmem_capacity_bytes", 0))
        if cap:
            return cap <= 96 * 1024 * 1024
    except Exception:
        pass
    return True   # unknown part: conservative (v7x-safe) sizing


def _default_mxu_dtype():
    """bf16 MXU operands on v6e/v7x; f32 on v5e (no bf16 VPU for the casts)."""
    try:
        kind = jax.devices()[0].device_kind.lower()
    except Exception:
        kind = ""
    if "v5 lite" in kind or "v5e" in kind or "v5litepod" in kind:
        return jnp.float32
    return jnp.bfloat16


def _contrastive_kernel(x_ref, wt_ref, pad_ref, out_ref, *, n_valid: int):
    """One batch block per grid step.

    x_ref:   (Bb, Np, D)   zero-padded measurements (mxu dtype)
    wt_ref:  (D,  D)       pre-transposed weight W^T (in_features, out_features)
    pad_ref: (Bb, 1,  Np)  f32 1.0 where the measurement is padding
    out_ref: (Bb, R,  Np)  log-softmax similarity matrix (lane-dense columns)
    n_valid: number of real measurements N (<= R <= Np).
    """
    bb, np_, d_in = x_ref.shape
    d_out = wt_ref.shape[1]
    r = out_ref.shape[1]

    # ---- z = x @ W^T : plain (M, K) @ (K, N) MXU feed, f32 accumulation ----
    x2d = x_ref[...].reshape(bb * np_, d_in)
    z = lax.dot_general(x2d, wt_ref[...],
                        dimension_numbers=(((1,), (0,)), ((), ())),
                        preferred_element_type=jnp.float32)

    # ---- F.normalize(z, dim=-1): z * rsqrt(max(||z||^2, eps^2)), eps=1e-12 ----
    ss = jnp.sum(z * z, axis=-1, keepdims=True)
    z = z * lax.rsqrt(jnp.maximum(ss, jnp.float32(1e-24)))
    z = z.reshape(bb, np_, d_out)

    # ---- dots[b, :R] = z[b, :R] @ z[b]^T : batched contraction on features ----
    z_mxu = z.astype(x_ref.dtype)       # bf16 on v6e/v7x, no-op on v5e
    dots = lax.dot_general(z_mxu[:, :r, :], z_mxu,
                           dimension_numbers=(((2,), (2,)), ((0,), (0,))),
                           preferred_element_type=jnp.float32)   # (Bb, R, Np)

    # ---- masks: diagonal, synthetic lane-padding columns, padded measurements ----
    row = lax.broadcasted_iota(jnp.int32, (r, np_), 0)
    col = lax.broadcasted_iota(jnp.int32, (r, np_), 1)
    diag = row == col                                             # (R, Np)
    col_valid = col < n_valid                                     # (R, Np)

    pad_c = pad_ref[...]                                          # (Bb, 1, Np)
    # Row-broadcast pad mask without a lane-dim-1 input or an in-kernel
    # transpose: pick pad[i] out of the lane axis with a masked lane reduce.
    pad_r = jnp.sum(jnp.where(diag[None], pad_c, jnp.float32(0.0)),
                    axis=-1, keepdims=True)                       # (Bb, R, 1)
    mask = ((diag | (col >= n_valid))[None]
            | (pad_c > 0.0) | (pad_r > 0.0))                      # (Bb, R, Np)

    # ---- numerically stable log_softmax over the N real columns ----
    masked = jnp.where(mask, jnp.float32(_NEG_FILL), dots)
    m = jnp.max(masked, axis=-1, keepdims=True)
    masked = masked - m
    denom = jnp.sum(jnp.where(col_valid[None], jnp.exp(masked), jnp.float32(0.0)),
                    axis=-1, keepdims=True)
    out_ref[...] = (masked - jnp.log(denom)).astype(out_ref.dtype)


def _pick_block_b(batch, n_pad, n_rows, d_model, mxu_dtype, out_dtype,
                  budget_bytes, keep_two_steps):
    """How many batch elements to fold into one grid step."""
    in_b = jnp.dtype(mxu_dtype).itemsize
    out_b = jnp.dtype(out_dtype).itemsize
    per_elem = (2 * n_pad * d_model * in_b        # double-buffered x block
                + 2 * n_pad * 4                   # pad-mask block (tiny)
                + 2 * n_rows * n_pad * out_b      # double-buffered out block
                + 2 * n_pad * d_model * 4         # z (f32) + z_mxu intermediates
                + 3 * n_rows * n_pad * 4)         # dots / mask / shifted temps
    cap = max(1, budget_bytes // max(per_elem, 1))
    if keep_two_steps and batch >= 2:
        cap = min(cap, max(1, batch // 2))        # v7x: >= 2 steps for 2 TensorCores
    best = 1
    for cand in range(1, batch + 1):
        if batch % cand == 0 and cand <= cap:
            best = cand
    return best


def contrastive_classifier(x, weight, padding_mask=None, *, block_b=None,
                           mxu_dtype=None, out_dtype=jnp.float32,
                           full_output=False):
    """x: (B, N, D); weight: (D, D) laid out like nn.Linear (out, in), no bias;
    padding_mask: optional (B, N) bool (True = padded).

    Returns (B, N, N) log-probabilities (module parity).  With
    full_output=True returns the raw (B, R, Np) kernel output (real values in
    [:, :N, :N]) and skips the extra post-kernel HBM copy on the hot path.
    """
    B, N, D = x.shape
    assert weight.shape == (D, D)

    n_pad = max(128, _round_up(N, 128))   # lane-dense output columns
    n_rows = max(8, _round_up(N, 8))      # sublane-aligned output rows (R)

    if mxu_dtype is None:
        mxu_dtype = _default_mxu_dtype()

    small_vmem = _is_small_vmem_part()
    if small_vmem:                              # v7x: 64 MiB per TC
        budget_bytes = 12 * 1024 * 1024
        vmem_limit = 48 * 1024 * 1024
    else:                                       # v5e / v6e: 128 MiB
        budget_bytes = 36 * 1024 * 1024
        vmem_limit = 96 * 1024 * 1024

    if block_b is None:
        block_b = _pick_block_b(B, n_pad, n_rows, D, mxu_dtype, out_dtype,
                                budget_bytes=budget_bytes,
                                keep_two_steps=small_vmem)
    assert B % block_b == 0

    x_p = jnp.pad(x, ((0, 0), (0, n_pad - N), (0, 0))).astype(mxu_dtype)
    wt = jnp.asarray(weight, jnp.float32).T.astype(mxu_dtype)     # (in, out)
    pad_f = jnp.zeros((B, 1, n_pad), jnp.float32)
    if padding_mask is not None:
        pad_f = pad_f.at[:, 0, :N].set(padding_mask.astype(jnp.float32))

    kernel = functools.partial(_contrastive_kernel, n_valid=N)
    out_p = pl.pallas_call(
        kernel,
        out_shape=jax.ShapeDtypeStruct((B, n_rows, n_pad), out_dtype),
        grid_spec=pltpu.PrefetchScalarGridSpec(
            num_scalar_prefetch=0,
            grid=(B // block_b,),
            in_specs=[
                pl.BlockSpec((block_b, n_pad, D), lambda b: (b, 0, 0)),   # x
                pl.BlockSpec((D, D), lambda b: (0, 0)),                   # W^T (resident)
                pl.BlockSpec((block_b, 1, n_pad), lambda b: (b, 0, 0)),   # pad mask
            ],
            out_specs=pl.BlockSpec((block_b, n_rows, n_pad), lambda b: (b, 0, 0)),
        ),
        compiler_params=pltpu.CompilerParams(
            dimension_semantics=("parallel",),
            vmem_limit_bytes=vmem_limit,
        ),
    )(x_p, wt, pad_f)

    if full_output:
        return out_p
    return out_p[:, :N, :N]


def _reference(x, weight, padding_mask=None):
    # Pure-JAX mirror of the PyTorch forward at full f32 matmul precision.
    hi = lax.Precision.HIGHEST
    z = jnp.einsum("bnd,od->bno", x, weight, precision=hi)
    z = z / jnp.maximum(jnp.linalg.norm(z, axis=-1, keepdims=True), 1e-12)
    dots = jnp.einsum("bnd,bmd->bnm", z, z, precision=hi)
    B, N, _ = dots.shape
    eye = jnp.eye(N, dtype=bool)[None]
    if padding_mask is None:
        pad = jnp.zeros((B, N, N), dtype=bool)
    else:
        p = jnp.broadcast_to(padding_mask[:, None, :], (B, N, N))
        pad = p | jnp.swapaxes(p, 1, 2)
    masked = jnp.where(eye | pad, _NEG_FILL, dots)
    return jax.nn.log_softmax(masked, axis=2)


if __name__ == "__main__":
    B, N, D = 2, 8, 32   # batch, n_measurements, d_model
    key = jax.random.PRNGKey(0)
    kx, kw = jax.random.split(key)

    x = jax.random.normal(kx, (B, N, D), dtype=jnp.float32)
    # nn.Linear-style init: U(-1/sqrt(D), 1/sqrt(D)), bias=False.
    bound = 1.0 / jnp.sqrt(jnp.float32(D))
    weight = jax.random.uniform(kw, (D, D), dtype=jnp.float32,
                                minval=-bound, maxval=bound)
    # Padding mask: last 2 measurements of batch element 1 are padding.
    padding_mask = jnp.zeros((B, N), dtype=bool).at[1, -2:].set(True)

    out = contrastive_classifier(x, weight, padding_mask)
    out = jax.block_until_ready(out)
    ref = _reference(x, weight, padding_mask)

    assert out.shape == (B, N, N)
    # Tolerance covers the bf16 MXU operands / approximate rsqrt inside the
    # kernel vs. the HIGHEST-precision f32 reference; masking/softmax logic
    # matches exactly.
    assert jnp.allclose(out, ref, atol=5e-2, rtol=5e-2), "mismatch vs reference"

    print("KERNEL_OK")
</pallas_src>

<mosaic_0001>
module attributes {stable_mosaic.version = 11 : i64} {
  func.func @_contrastive_kernel(%arg0: i32, %arg1: memref<1x128x32xbf16, #tpu.memory_space<vmem>>, %arg2: memref<32x32xbf16, #tpu.memory_space<vmem>>, %arg3: memref<1x1x128xf32, #tpu.memory_space<vmem>>, %arg4: memref<1x8x128xf32, #tpu.memory_space<vmem>>) attributes {dimension_semantics = [#tpu.dimension_semantics<parallel>], iteration_bounds = array<i64: 2>, scalar_prefetch = 0 : i64, scratch_operands = 0 : i64, tpu.core_type = #tpu.core_type<tc>, window_params = [{transform_indices = @transform_0, window_bounds = array<i64: 1, 128, 32>}, {pipeline_mode = #tpu.pipeline_mode<synchronous>, transform_indices = @transform_1, window_bounds = array<i64: 32, 32>}, {transform_indices = @transform_2, window_bounds = array<i64: 1, 1, 128>}, {transform_indices = @transform_3, window_bounds = array<i64: 1, 8, 128>}]} {
    %c0 = arith.constant 0 : index
    %c0_0 = arith.constant 0 : index
    %c0_1 = arith.constant 0 : index
    %0 = vector.load %arg1[%c0, %c0_0, %c0_1] : memref<1x128x32xbf16, #tpu.memory_space<vmem>>, vector<1x128x32xbf16>
    %1 = vector.shape_cast %0 : vector<1x128x32xbf16> to vector<128x32xbf16>
    %c0_2 = arith.constant 0 : index
    %c0_3 = arith.constant 0 : index
    %2 = vector.load %arg2[%c0_2, %c0_3] : memref<32x32xbf16, #tpu.memory_space<vmem>>, vector<32x32xbf16>
    %cst = arith.constant dense<0.000000e+00> : vector<128x32xf32>
    %3 = tpu.matmul %1, %2, %cst {dimension_numbers = #tpu.dot_dimension_numbers<[1], [0], [0], [1], [0, 0, 1, 1], [], []>} : vector<128x32xbf16>, vector<32x32xbf16>, vector<128x32xf32> -> vector<128x32xf32>
    %4 = arith.mulf %3, %3 : vector<128x32xf32>
    %cst_4 = arith.constant dense<0.000000e+00> : vector<128xf32>
    %5 = vector.multi_reduction <add>, %4, %cst_4 [1] : vector<128x32xf32> to vector<128xf32>
    %6 = vector.shape_cast %5 : vector<128xf32> to vector<128x1xf32>
    %cst_5 = arith.constant 1.000000e-24 : f32
    %7 = vector.broadcast %cst_5 : f32 to vector<128x1xf32>
    %8 = arith.maximumf %6, %7 : vector<128x1xf32>
    %9 = math.rsqrt %8 : vector<128x1xf32>
    %10 = vector.broadcast %9 : vector<128x1xf32> to vector<128x32xf32>
    %11 = arith.mulf %3, %10 : vector<128x32xf32>
    %12 = vector.shape_cast %11 : vector<128x32xf32> to vector<1x128x32xf32>
    %13 = arith.truncf %12 : vector<1x128x32xf32> to vector<1x128x32xbf16>
    %14 = vector.extract_strided_slice %13 {offsets = [0, 0, 0], sizes = [1, 8, 32], strides = [1, 1, 1]} : vector<1x128x32xbf16> to vector<1x8x32xbf16>
    %cst_6 = arith.constant dense<0.000000e+00> : vector<1x8x128xf32>
    %15 = tpu.matmul %14, %13, %cst_6 {dimension_numbers = #tpu.dot_dimension_numbers<[2], [2], [1], [1], [0, 0, 0, 1, 1, 1], [0], [0]>} : vector<1x8x32xbf16>, vector<1x128x32xbf16>, vector<1x8x128xf32> -> vector<1x8x128xf32>
    %16 = tpu.iota {dimensions = array<i32: 0>} : vector<8x128xi32>
    %17 = tpu.iota {dimensions = array<i32: 1>} : vector<8x128xi32>
    %18 = arith.cmpi eq, %16, %17 : vector<8x128xi32>
    %c8_i32 = arith.constant 8 : i32
    %19 = vector.broadcast %c8_i32 : i32 to vector<8x128xi32>
    %20 = arith.cmpi slt, %17, %19 : vector<8x128xi32>
    %c0_7 = arith.constant 0 : index
    %c0_8 = arith.constant 0 : index
    %c0_9 = arith.constant 0 : index
    %21 = vector.load %arg3[%c0_7, %c0_8, %c0_9] : memref<1x1x128xf32, #tpu.memory_space<vmem>>, vector<1x1x128xf32>
    %22 = vector.shape_cast %18 : vector<8x128xi1> to vector<1x8x128xi1>
    %cst_10 = arith.constant 0.000000e+00 : f32
    %23 = vector.shape_cast %21 : vector<1x1x128xf32> to vector<1x1x128xf32>
    %24 = vector.broadcast %23 : vector<1x1x128xf32> to vector<1x8x128xf32>
    %25 = vector.broadcast %cst_10 : f32 to vector<1x8x128xf32>
    %26 = arith.select %22, %24, %25 : vector<1x8x128xi1>, vector<1x8x128xf32>
    %cst_11 = arith.constant dense<0.000000e+00> : vector<1x8xf32>
    %27 = vector.multi_reduction <add>, %26, %cst_11 [2] : vector<1x8x128xf32> to vector<1x8xf32>
    %28 = vector.shape_cast %27 : vector<1x8xf32> to vector<1x8x1xf32>
    %c8_i32_12 = arith.constant 8 : i32
    %29 = vector.broadcast %c8_i32_12 : i32 to vector<8x128xi32>
    %30 = arith.cmpi sge, %17, %29 : vector<8x128xi32>
    %31 = arith.ori %18, %30 : vector<8x128xi1>
    %32 = vector.shape_cast %31 : vector<8x128xi1> to vector<1x8x128xi1>
    %cst_13 = arith.constant 0.000000e+00 : f32
    %33 = vector.broadcast %cst_13 : f32 to vector<1x1x128xf32>
    %34 = arith.cmpf ogt, %21, %33 : vector<1x1x128xf32>
    %35 = vector.broadcast %34 : vector<1x1x128xi1> to vector<1x8x128xi1>
    %36 = arith.ori %32, %35 : vector<1x8x128xi1>
    %cst_14 = arith.constant 0.000000e+00 : f32
    %37 = vector.broadcast %cst_14 : f32 to vector<1x8x1xf32>
    %38 = arith.cmpf ogt, %28, %37 : vector<1x8x1xf32>
    %39 = vector.broadcast %38 : vector<1x8x1xi1> to vector<1x8x128xi1>
    %40 = arith.ori %36, %39 : vector<1x8x128xi1>
    %cst_15 = arith.constant -1.000000e+08 : f32
    %41 = vector.broadcast %cst_15 : f32 to vector<1x8x128xf32>
    %42 = arith.select %40, %41, %15 : vector<1x8x128xi1>, vector<1x8x128xf32>
    %cst_16 = arith.constant dense<0xFF800000> : vector<1x8xf32>
    %43 = vector.multi_reduction <maximumf>, %42, %cst_16 [2] : vector<1x8x128xf32> to vector<1x8xf32>
    %44 = vector.shape_cast %43 : vector<1x8xf32> to vector<1x8x1xf32>
    %45 = vector.broadcast %44 : vector<1x8x1xf32> to vector<1x8x128xf32>
    %46 = arith.subf %42, %45 : vector<1x8x128xf32>
    %47 = vector.shape_cast %20 : vector<8x128xi1> to vector<1x8x128xi1>
    %48 = math.exp %46 : vector<1x8x128xf32>
    %cst_17 = arith.constant 0.000000e+00 : f32
    %49 = vector.broadcast %cst_17 : f32 to vector<1x8x128xf32>
    %50 = arith.select %47, %48, %49 : vector<1x8x128xi1>, vector<1x8x128xf32>
    %cst_18 = arith.constant dense<0.000000e+00> : vector<1x8xf32>
    %51 = vector.multi_reduction <add>, %50, %cst_18 [2] : vector<1x8x128xf32> to vector<1x8xf32>
    %52 = vector.shape_cast %51 : vector<1x8xf32> to vector<1x8x1xf32>
    %53 = math.log %52 : vector<1x8x1xf32>
    %54 = vector.broadcast %53 : vector<1x8x1xf32> to vector<1x8x128xf32>
    %55 = arith.subf %46, %54 : vector<1x8x128xf32>
    %c0_19 = arith.constant 0 : index
    %c0_20 = arith.constant 0 : index
    %c0_21 = arith.constant 0 : index
    %56 = vector.load %arg4[%c0_19, %c0_20, %c0_21] : memref<1x8x128xf32, #tpu.memory_space<vmem>>, vector<1x8x128xf32>
    tpu.vector_store %arg4[%c0_19, %c0_20, %c0_21], %55 {strides = array<i32>} : memref<1x8x128xf32, #tpu.memory_space<vmem>>, vector<1x8x128xf32>,
    return
  }
  func.func @transform_0(%arg0: i32) -> (i32, i32, i32) {
    %c0_i32 = arith.constant 0 : i32
    %c0_i32_0 = arith.constant 0 : i32
    %c0_i32_1 = arith.constant 0 : i32
    return %arg0, %c0_i32, %c0_i32_0 : i32, i32, i32
  }
  func.func @transform_1(%arg0: i32) -> (i32, i32) {
    %c0_i32 = arith.constant 0 : i32
    %c0_i32_0 = arith.constant 0 : i32
    %c0_i32_1 = arith.constant 0 : i32
    return %c0_i32, %c0_i32_0 : i32, i32
  }
  func.func @transform_2(%arg0: i32) -> (i32, i32, i32) {
    %c0_i32 = arith.constant 0 : i32
    %c0_i32_0 = arith.constant 0 : i32
    %c0_i32_1 = arith.constant 0 : i32
    return %arg0, %c0_i32, %c0_i32_0 : i32, i32, i32
  }
  func.func @transform_3(%arg0: i32) -> (i32, i32, i32) {
    %c0_i32 = arith.constant 0 : i32
    %c0_i32_0 = arith.constant 0 : i32
    %c0_i32_1 = arith.constant 0 : i32
    return %arg0, %c0_i32, %c0_i32_0 : i32, i32, i32
  }
}

</mosaic_0001>

<bundles_post_ra>
// kernel: tpu_custom_call.1
= control target key start
LH: loop header
LB: loop body
LE: loop exit
PB: predicated region body
PF: predicated region fallthrough
CT: control target
= control target key end

     0   :  { %8 = vsyncpa [#allocation3], 0  ;;  %s1539_s0 = inlined_call_operand.vmem [shape: bf16[2,128,32], index: 0, kind: input, shape index: {}]   ;;  %s1540_s1 = inlined_call_operand.vmem [shape: bf16[32,32], index: 1, kind: input, shape index: {}]   ;;  %s1541_s2 = inlined_call_operand.vmem [shape: f32[2,1,128], index: 2, kind: input, shape index: {}]   ;;  %s1542_s3 = inlined_call_operand.hbm [shape: f32[2,8,128], index: 3, kind: output, shape index: {}]  }
   0x1   :  { %10 = vsyncpa [#allocation3 + $0x1], 0  ;;  %s1040_s12 = smov 0   ;;  %s1042_s13 = smov 0  }
   0x2   :  { %s1044_s14 = smov 0   ;;  %s1046_s15 = smov 0  }
   0x3 LB: > { %s1061_s16 = sadd.s32 4294967295, %s1017_s15   ;;  %s803_s17 = sadd.s32 4294967294, %s1017_s15   ;;  %s1017_s15 = sphi %s1046_s15, %s1578_s15   ;;  %s1013_s14 = sphi %s1044_s14, %s1577_s14   ;;  %s1009_s13 = sphi %s1042_s13, %s1576_s13   ;;  %s1005_s12 = sphi %s1040_s12, %s1575_s12  }
   0x4   : > { %s1065_s18 = sadd.s32 1, %s1017_s15   ;;  %s96_s19 = sadd.s32 1, %s1013_s14 }
   0x5   : > { %s93_s20 = ssub.s32 %s1017_s15, %s1065_s18  ;;  %p106_p0 = scmp.ne.s32.totalorder %s1013_s14, %s1009_s13 }
   0x6   : > { %p94_p1 = scmp.eq.s32.totalorder %s93_s20, 0  ;;  %p107_p2 = scmp.eq.s32.totalorder %s1061_s16, 1 }
   0x7   : > { %p112_p3 = scmp.ne.s32.totalorder %s1009_s13, %s1005_s12  ;;  %p113_p4 = scmp.eq.s32.totalorder %s803_s17, 1 }
   0x8   : > { %s1076_s21 = scalar_select %p94_p1, %s1013_s14, %s96_s19  }
   0x9   : > { %p1078_p5 = por %p107_p2, %p106_p0  ;;  %p1082_p6 = por %p113_p4, %p112_p3 }
   0xa   : > { %p806_p7 = scmp.ge.s32.totalorder %s1017_s15, 1  ;;  %p148_p8 = scmp.lt.s32.totalorder %s1017_s15, 3 }
   0xc   : > { %p149_p9 = pnand %p806_p7, %p148_p8 }
   0xd   : > { %p175_p10 = scmp.lt.s32.totalorder (!%p149_p9), %s1061_s16, 1  ;;  %s172_s9 = sand.u32 (!%p149_p9), 1, %s1009_s13  }
   0xe   : > { %152 = sbr.rel (%p149_p9) target bundleno = 811 (0x32b), region = 32  ;;  %s807_s10 = sshll.u32 (!%p149_p9), %s172_s9, 3 }
   0xf   : > { %s860_s11 = sshll.u32 (!%p149_p9), %s1061_s16, 3  ;;  %s174_s24 = scalar_lea.vmem (!%p149_p9), [#allocation2], %s807_s10 }
  0x10   : > { %s730_s20 = scalar_lea.hbm (!%p149_p9), %s1542_s3, %s860_s11  ;;  %s732_s25 = sshll.u32 (!%p149_p9), %s174_s24, 4  ;;  %s733_s25 = int_to_ptr.vmem [resolvable:$true] %s732_s25 }
  0x11   : > { %s734_s26 = sshll.u32 (!%p149_p9), %s730_s20, 4  ;;  %s720_s27 = scalar_lea.sflag (!%p149_p9), [#allocation3], %s172_s9  ;;  %s735_s26 = int_to_ptr.hbm [resolvable:$true] %s734_s26 }
  0x12   : > { %s975_s4 = scalar_lea.hbm (!%p149_p9), %s1542_s3, 16 }
  0x13   : > { %v873_v0 = vld [vmem:[%s1540_s1 + $0x8] sm:$0xff]  ;;  %v872_v1 = vld [vmem:[%s1540_s1] sm:$0xff]  ;;  %s1096_s28 = scalar_select %p175_p10, %s1061_s16, 1  ;;  %vm256_vm0 = vcmask 261120  }
  0x14   : > { %875 = vmatpush.bf16.msra.mxu3 %v873_v0  ;;  %287 = vmatpush.bf16.msra.mxu0 %v873_v0 }
  0x15   : > { %874 = vmatpush.bf16.msra.mxu2 %v873_v0  ;;  %s863_s29 = sshll.u32 %s1096_s28, 6  ;;  %s182_s8 = scalar_lea.vmem %s1541_s2, %s1096_s28 }
  0x16   : > { %s179_s5 = scalar_lea.vmem %s1539_s0, %s863_s29  ;;  %s969_s28 = sshra.s32 %s735_s26, 4  ;;  %s970_s28 = int_to_ptr.hbm [resolvable:$true] %s969_s28 }
  0x17   : > { %v868_v2 = vld [vmem:[%s179_s5 + $0x20] sm:$0xff]  ;;  %v867_v4 = vld [vmem:[%s179_s5 + $0x18] sm:$0xff]  ;;  %v869_v5 = vld [vmem:[%s179_s5 + $0x28] sm:$0xff]  ;;  %s971_s29 = scalar_lea.hbm %s970_s28, 8  ;;  %p976_p0 = scmp.lt.s32.totalorder %s970_s28, %s1542_s3 }
  0x18   : > { %877 = vmatpush.bf16.msra.mxu3 %v872_v1  ;;  %288 = vmatpush.bf16.msra.mxu0 %v872_v1  ;;  %v864_v3 = vld [vmem:[%s179_s5] sm:$0xff]  ;;  %v865_v6 = vld [vmem:[%s179_s5 + $0x8] sm:$0xff]  ;;  %v870_v7 = vld [vmem:[%s179_s5 + $0x30] sm:$0xff]  ;;  %p972_p11 = scmp.ne.s32.totalorder %s970_s28, %s971_s29  ;;  %p977_p1 = scmp.lt.s32.totalorder %s975_s4, %s971_s29 }
  0x19   : > { %876 = vmatpush.bf16.msra.mxu2 %v872_v1  ;;  %v866_v8 = vld [vmem:[%s179_s5 + $0x10] sm:$0xff]  ;;  %v871_v9 = vld [vmem:[%s179_s5 + $0x38] sm:$0xff] }
  0x1a   : > { %p973_p12 = pnand %p972_p11, %p1078_p5  ;;  %p978_p2 = por %p977_p1, %p976_p0 }
  0x1b   : > { %854 = vmatmul.msk.bf16.vlgmr.msra.gmra.mxu3 %vm256_vm0, %v868_v2  ;;  %850 = vmatmul.msk.bf16.vlgmr.msra.gmra.mxu0 %vm256_vm0, %v864_v3 }
  0x1c   : > { %853 = vmatmul.msk.bf16.vlgmr.msra.gmra.mxu2 %vm256_vm0, %v867_v4  ;;  %p974_p13 = pneg %p973_p12 }
  0x1e   : > { %p979_p3 = pnand %p978_p2, %p974_p13 }
  0x2b   : > { %855 = vmatmul.msk.bf16.gmra.mxu3 %vm256_vm0, %v869_v5  ;;  %851 = vmatmul.msk.bf16.gmra.mxu0 %vm256_vm0, %v865_v6 }
  0x3b   : > { %856 = vmatmul.msk.bf16.gmra.mxu3 %vm256_vm0, %v870_v7  ;;  %852 = vmatmul.msk.bf16.gmra.mxu0 %vm256_vm0, %v866_v8 }
  0x4b   : > { %857 = vmatmul.msk.bf16.gmra.mxu3 %vm256_vm0, %v871_v9 }
  0x98   : > { %v1110_v10 = vpop.f32.mrf.mxu0 }
  0x99   : > { %v330_v35 = vmul.f32 %v1110_v10, %v1110_v10 }
  0x9b   : > { %v346_v39 = vsel %vm256_vm0, %v330_v35, 0.0 }
  0x9e   : > { %v1112_v11 = vpop.f32.mrf.mxu3 }
  0x9f   : > { %v1133_v22 = vpop.f32.mrf.mxu2  ;;  %v338_v48 = vmul.f32 %v1112_v11, %v1112_v11 }
  0xa0   : > { %v1114_v12 = vpop.f32.mrf.mxu0  ;;  %v336_v24 = vmul.f32 %v1133_v22, %v1133_v22 }
  0xa1   : > { %v370_v51 = vsel %vm256_vm0, %v338_v48, 0.0  ;;  %v331_v56 = vmul.f32 %v1114_v12, %v1114_v12 }
  0xa2   : > { %v364_v27 = vsel %vm256_vm0, %v336_v24, 0.0 }
  0xa3   : > { %v349_v57 = vsel %vm256_vm0, %v331_v56, 0.0 }
  0xa6   : > { %v1116_v13 = vpop.f32.mrf.mxu3 }
  0xa7   : > { %v339_v36 = vmul.f32 %v1116_v13, %v1116_v13  ;;  %v1178_v50 = vpop.f32.mrf.mxu2 }
  0xa8   : > { %v1118_v14 = vpop.f32.mrf.mxu0  ;;  %v337_v52 = vmul.f32 %v1178_v50, %v1178_v50 }
  0xa9   : > { %v373_v40 = vsel %vm256_vm0, %v339_v36, 0.0  ;;  %v332_v54 = vmul.f32 %v1118_v14, %v1118_v14 }
  0xaa   : > { %v367_v53 = vsel %vm256_vm0, %v337_v52, 0.0 }
  0xab   : > { %v352_v55 = vsel %vm256_vm0, %v332_v54, 0.0 }
  0xae   : > { %v1120_v15 = vpop.f32.mrf.mxu3 }
  0xaf   : > { %v340_v16 = vmul.f32 %v1120_v15, %v1120_v15 }
  0xb0   : > { %v1124_v17 = vpop.f32.mrf.mxu0 }
  0xb1   : > { %v376_v18 = vsel %vm256_vm0, %v340_v16, 0.0  ;;  %v333_v47 = vmul.f32 %v1124_v17, %v1124_v17 }
  0xb2   : > { %377 = vadd.xlane.f32.xlu2 %v376_v18 }
  0xb3   : > { %v355_v49 = vsel %vm256_vm0, %v333_v47, 0.0 }
  0xb6   : > { %v1127_v19 = vpop.f32.mrf.mxu3 }
  0xb7   : > { %v341_v20 = vmul.f32 %v1127_v19, %v1127_v19 }
  0xb8   : > { %v1131_v21 = vpop.f32.mrf.mxu0 }
  0xb9   : > { %v379_v23 = vsel %vm256_vm0, %v341_v20, 0.0  ;;  %v334_v42 = vmul.f32 %v1131_v21, %v1131_v21 }
  0xba   : > { %380 = vadd.xlane.f32.xlu2 %v379_v23 }
  0xbb   : > { %v358_v45 = vsel %vm256_vm0, %v334_v42, 0.0 }
  0xbe   : > { %v1138_v25 = vpop.f32.mrf.mxu3 }
  0xbf   : > { %v342_v26 = vmul.f32 %v1138_v25, %v1138_v25 }
  0xc0   : > { %v1143_v28 = vpop.f32.mrf.mxu0 }
  0xc1   : > { %v382_v29 = vsel %vm256_vm0, %v342_v26, 0.0  ;;  %v335_v30 = vmul.f32 %v1143_v28, %v1143_v28 }
  0xc2   : > { %383 = vadd.xlane.f32.xlu1 %v382_v29  ;;  %365 = vadd.xlane.f32.xlu2 %v364_v27 }
  0xc3   : > { %v361_v33 = vsel %vm256_vm0, %v335_v30, 0.0 }
  0xc6   : > { %v1148_v31 = vpop.f32.mrf.mxu3 }
  0xc7   : > { %v343_v32 = vmul.f32 %v1148_v31, %v1148_v31 }
  0xc9   : > { %v385_v34 = vsel %vm256_vm0, %v343_v32, 0.0 }
  0xca   : > { %386 = vadd.xlane.f32.xlu1 %v385_v34  ;;  %362 = vadd.xlane.f32.xlu2 %v361_v33 }
  0xce   : > { %v1158_v37 = vpop.f32.mrf.mxu3 }
  0xcf   : > { %v344_v38 = vmul.f32 %v1158_v37, %v1158_v37 }
  0xd1   : > { %v388_v41 = vsel %vm256_vm0, %v344_v38, 0.0 }
  0xd2   : > { %374 = vadd.xlane.f32.xlu1 %v373_v40  ;;  %389 = vadd.xlane.f32.xlu0 %v388_v41 }
  0xd3   : > { %347 = vadd.xlane.f32.xlu2 %v346_v39 }
  0xd6   : > { %v1167_v43 = vpop.f32.mrf.mxu3 }
  0xd7   : > { %v345_v44 = vmul.f32 %v1167_v43, %v1167_v43 }
  0xd9   : > { %v391_v46 = vsel %vm256_vm0, %v345_v44, 0.0 }
  0xda   : > { %392 = vadd.xlane.f32.xlu0 %v391_v46  ;;  %359 = vadd.xlane.f32.xlu1 %v358_v45 }
  0xe2   : > { %371 = vadd.xlane.f32.xlu0 %v370_v51  ;;  %356 = vadd.xlane.f32.xlu1 %v355_v49 }
  0xea   : > { %368 = vadd.xlane.f32.xlu0 %v367_v53 }
  0xf2   : > { %353 = vadd.xlane.f32.xlu0 %v352_v55 }
  0xfa   : > { %350 = vadd.xlane.f32.xlu0 %v349_v57 }
 0x125   : > { %v378_v59 = vpop.xlane.xlu2 %377 }
 0x126   : > { %v1194_v0 = vmax.f32 %v378_v59, 1e-24 }
 0x128   : > { %vm516_vm15 = vweird.f32 %v1194_v0 }
 0x12d   : > { %v381_v61 = vpop.xlane.xlu2 %380 }
 0x12e   : > { %v1196_v1 = vmax.f32 %v381_v61, 1e-24 }
 0x135   : > { %v384_v58 = vpop.xlane.xlu1 %383  ;;  %v366_v36 = vpop.xlane.xlu2 %365 }
 0x136   : > { %v1192_v63 = vmax.f32 %v384_v58, 1e-24  ;;  %v1231_v49 = vmax.f32 %v366_v36, 1e-24 }
 0x138   : > { %vm536_vm11 = vweird.f32 %v1192_v63 }
 0x13d   : > { %v387_v60 = vpop.xlane.xlu1 %386 }
 0x13e   : > { %v1190_v62 = vmax.f32 %v387_v60, 1e-24 }
 0x140   : > { %919 = vrsqrt.f32 %v1190_v62  ;;  %vm546_vm6 = vweird.f32 %v1190_v62 }
 0x141   : > { %921 = vrsqrt.f32 %v1192_v63 }
 0x142   : > { %923 = vrsqrt.f32 %v1194_v0 }
 0x143   : > { %925 = vrsqrt.f32 %v1196_v1 }
 0x145   : > { %v390_v2 = vpop.xlane.xlu0 %389  ;;  %v375_v23 = vpop.xlane.xlu1 %374 }
 0x146   : > { %v408_v3 = vmax.f32 %v390_v2, 1e-24  ;;  %v1202_v4 = vpop.eup %919  ;;  %v1223_v32 = vmax.f32 %v375_v23, 1e-24  ;;  %v363_v23 = vpop.xlane.xlu2 %362 }
 0x147   : > { %v1204_v5 = vpop.eup %921  ;;  %v541_v8 = vmul.f32 %v1202_v4, %v1190_v62  ;;  %vm547_vm5 = vweird.f32 %v1202_v4 }
 0x148   : > { %927 = vrsqrt.f32 %v408_v3  ;;  %v1206_v6 = vpop.eup %923  ;;  %v531_v16 = vmul.f32 %v1204_v5, %v1192_v63  ;;  %vm556_vm2 = vweird.f32 %v408_v3  ;;  %vm537_vm3 = vweird.f32 %v1204_v5  ;;  %vm1261_vm9 = vmor %vm546_vm6, %vm547_vm5 }
 0x149   : > { %v1208_v7 = vpop.eup %925  ;;  %v511_v24 = vmul.f32 %v1206_v6, %v1194_v0  ;;  %v542_v29 = vmul.f32 %v1202_v4, %v541_v8  ;;  %vm517_vm8 = vweird.f32 %v1206_v6  ;;  %vm1282_vm14 = vmor %vm536_vm11, %vm537_vm3 }
 0x14a   : > { %v521_v26 = vmul.f32 %v1208_v7, %v1196_v1  ;;  %v532_v30 = vmul.f32 %v1204_v5, %v531_v16  ;;  %vm527_vm13 = vweird.f32 %v1208_v7 }
 0x14b   : > { %v512_v34 = vmul.f32 %v1206_v6, %v511_v24  ;;  %v543_v39 = vmul.f32 0.5, %v542_v29 }
 0x14c   : > { %v522_v35 = vmul.f32 %v1208_v7, %v521_v26  ;;  %v533_v42 = vmul.f32 0.5, %v532_v30 }
 0x14d   : > { %v393_v9 = vpop.xlane.xlu0 %392  ;;  %v513_v47 = vmul.f32 0.5, %v512_v34  ;;  %v544_v51 = vsub.f32 1.5, %v543_v39  ;;  %v360_v60 = vpop.xlane.xlu1 %359 }
 0x14e   : > { %v1214_v18 = vmax.f32 %v393_v9, 1e-24  ;;  %v928_v20 = vpop.eup %927  ;;  %v523_v48 = vmul.f32 0.5, %v522_v35  ;;  %v534_v54 = vsub.f32 1.5, %v533_v42  ;;  %v1254_v29 = vmax.f32 %v360_v60, 1e-24 }
 0x14f   : > { %v551_v27 = vmul.f32 %v928_v20, %v408_v3  ;;  %vm557_vm1 = vweird.f32 %v928_v20  ;;  %v514_v57 = vsub.f32 1.5, %v513_v47  ;;  %v545_v61 = vmul.f32 %v1202_v4, %v544_v51 }
 0x150   : > { %929 = vrsqrt.f32 %v1214_v18  ;;  %v524_v58 = vsub.f32 1.5, %v523_v48  ;;  %vm1238_vm4 = vmor %vm556_vm2, %vm557_vm1  ;;  %v535_v16 = vmul.f32 %v1204_v5, %v534_v54  ;;  %vm566_vm10 = vweird.f32 %v1214_v18 }
 0x151   : > { %v552_v33 = vmul.f32 %v928_v20, %v551_v27  ;;  %931 = vrsqrt.f32 %v1223_v32  ;;  %v549_v35 = vsel %vm1261_vm9, %v1202_v4, %v545_v61  ;;  %vm526_vm1 = vweird.f32 %v1196_v1  ;;  %vm1297_vm2 = vmor %vm516_vm15, %vm517_vm8 }
 0x152   : > { %vm1308_vm3 = vmor %vm526_vm1, %vm527_vm13  ;;  %vm506_vm8 = vweird.f32 %v1223_v32  ;;  %vm476_vm9 = vweird.f32 %v1231_v49  ;;  %vm456_vm1 = vweird.f32 %v1254_v29 }
 0x153   : > { %v553_v38 = vmul.f32 0.5, %v552_v33  ;;  %v1269_v33 = vmax.f32 %v363_v23, 1e-24 }
 0x155   : > { %v372_v40 = vpop.xlane.xlu0 %371  ;;  %v554_v44 = vsub.f32 1.5, %v553_v38  ;;  %v515_v38 = vmul.f32 %v1206_v6, %v514_v57  ;;  %v357_v51 = vpop.xlane.xlu1 %356 }
 0x156   : > { %v930_v41 = vpop.eup %929  ;;  %v1228_v45 = vmax.f32 %v372_v40, 1e-24  ;;  %v539_v40 = vsel %vm1282_vm14, %v1204_v5, %v535_v16 }
 0x157   : > { %v561_v46 = vmul.f32 %v930_v41, %v1214_v18  ;;  %v555_v52 = vmul.f32 %v928_v20, %v554_v44  ;;  %v1234_v56 = vpop.eup %931  ;;  %vm567_vm7 = vweird.f32 %v930_v41  ;;  %v525_v18 = vmul.f32 %v1208_v7, %v524_v58 }
 0x158   : > { %933 = vrsqrt.f32 %v1228_v45  ;;  %v501_v26 = vmul.f32 %v1234_v56, %v1223_v32  ;;  %vm568_vm12 = vmor %vm566_vm10, %vm567_vm7  ;;  %v583_v44 = vmul.f32 %v549_v35, %v1148_v31  ;;  %v582_v1 = vmul.f32 %v539_v40, %v1138_v25 }
 0x159   : > { %v562_v53 = vmul.f32 %v930_v41, %v561_v46  ;;  %935 = vrsqrt.f32 %v1231_v49  ;;  %v559_v8 = vsel %vm1238_vm4, %v928_v20, %v555_v52  ;;  %v529_v54 = vsel %vm1308_vm3, %v1208_v7, %v525_v18 }
 0x15a   : > { %v584_v62 = vmul.f32 %v559_v8, %v1158_v37  ;;  %v502_v39 = vmul.f32 %v1234_v56, %v501_v26  ;;  %v599_v59 = vpack.c.bf16 %v583_v44, %v583_v44  ;;  %v581_v16 = vmul.f32 %v529_v54, %v1127_v19 }
 0x15b   : > { %v563_v55 = vmul.f32 0.5, %v562_v53  ;;  %v519_v53 = vsel %vm1297_vm2, %v1206_v6, %v515_v38  ;;  %v598_v6 = vpack.c.bf16 %v582_v1, %v582_v1  ;;  %vm507_vm5 = vweird.f32 %v1234_v56 }
 0x15c   : > { %v600_v42 = vpack.c.bf16 %v584_v62, %v584_v62  ;;  %v503_v48 = vmul.f32 0.5, %v502_v39  ;;  %v580_v26 = vmul.f32 %v519_v53, %v1120_v15  ;;  %v631_v62 = vunpack.c.l.b16 %v599_v59  ;;  %vm1363_vm11 = vmor %vm506_vm8, %vm507_vm5 }
 0x15d   : > { %v564_v2 = vsub.f32 1.5, %v563_v55  ;;  %v369_v3 = vpop.xlane.xlu0 %368  ;;  %v630_v18 = vunpack.c.l.b16 %v598_v6  ;;  %v597_v37 = vpack.c.bf16 %v581_v16, %v581_v16  ;;  %vm496_vm6 = vweird.f32 %v1228_v45 }
 0x15e   : > { %v1246_v9 = vpop.eup %933  ;;  %v1250_v24 = vmax.f32 %v369_v3, 1e-24  ;;  %v632_v57 = vunpack.c.l.b16 %v600_v42  ;;  %v1327_v3 = vmax.f32 %v357_v51, 1e-24  ;;  %v504_v7 = vsub.f32 1.5, %v503_v48 }
 0x15f   : > { %v565_v27 = vmul.f32 %v930_v41, %v564_v2  ;;  %v491_v30 = vmul.f32 %v1246_v9, %v1228_v45  ;;  %v1275_v36 = vpop.eup %935  ;;  %vm497_vm4 = vweird.f32 %v1246_v9  ;;  %v640_v44 = vpack.c.b16 %v631_v62, %v630_v18 }
 0x160   : > { %937 = vrsqrt.f32 %v1250_v24  ;;  %vm1348_vm7 = vmor %vm496_vm6, %vm497_vm4  ;;  %vm477_vm10 = vweird.f32 %v1275_v36  ;;  %v629_v32 = vunpack.c.l.b16 %v597_v37  ;;  %vm466_vm3 = vweird.f32 %v1269_v33 }
 0x161   : > { %v492_v34 = vmul.f32 %v1246_v9, %v491_v30  ;;  %v569_v63 = vsel %vm568_vm12, %v930_v41, %v565_v27  ;;  %939 = vrsqrt.f32 %v1254_v29  ;;  %v348_v27 = vpop.xlane.xlu2 %347  ;;  %v664_v51 = vsel %vm256_vm0, %v640_v44, 0  ;;  %vm1387_vm14 = vmor %vm476_vm9, %vm477_vm10 }
 0x162   : > { %v585_v4 = vmul.f32 %v569_v63, %v1167_v43  ;;  %v471_v43 = vmul.f32 %v1275_v36, %v1231_v49  ;;  %941 = vrsqrt.f32 %v1269_v33  ;;  %v505_v63 = vmul.f32 %v1234_v56, %v504_v7 }
 0x163   : > { %v493_v46 = vmul.f32 0.5, %v492_v34  ;;  %v1344_v39 = vmax.f32 %v348_v27, 1e-24  ;;  %vm486_vm12 = vweird.f32 %v1250_v24  ;;  %vm446_vm8 = vweird.f32 %v1327_v3 }
 0x164   : > { %v601_v47 = vpack.c.bf16 %v585_v4, %v585_v4  ;;  %v472_v25 = vmul.f32 %v1275_v36, %v471_v43 }
 0x165   : > { %v354_v5 = vpop.xlane.xlu0 %353  ;;  %v494_v61 = vsub.f32 1.5, %v493_v46 }
 0x166   : > { %v1304_v0 = vpop.eup %937  ;;  %v1321_v55 = vmax.f32 %v354_v5, 1e-24  ;;  %v633_v58 = vunpack.c.l.b16 %v601_v47  ;;  %v473_v34 = vmul.f32 0.5, %v472_v25  ;;  %v596_v47 = vpack.c.bf16 %v580_v26, %v580_v26 }
 0x167   : > { %v481_v52 = vmul.f32 %v1304_v0, %v1250_v24  ;;  %v1323_v60 = vpop.eup %939  ;;  %v495_v35 = vmul.f32 %v1246_v9, %v494_v61  ;;  %vm487_vm13 = vweird.f32 %v1304_v0  ;;  %v918_v61 = vld [vmem:[%s182_s8] ss:$0 sm:$0xff] }
 0x168   : > { %v641_v8 = vpack.c.b16 %v633_v58, %v632_v57  ;;  %v1330_v23 = vpop.eup %941  ;;  %v451_v30 = vmul.f32 %v1323_v60, %v1254_v29  ;;  %943 = vrsqrt.f32 %v1321_v55  ;;  %v474_v31 = vsub.f32 1.5, %v473_v34  ;;  %vm1393_vm15 = vmor %vm486_vm12, %vm487_vm13 }
 0x169   : > { %v482_v2 = vmul.f32 %v1304_v0, %v481_v52  ;;  %v461_v15 = vmul.f32 %v1330_v23, %v1269_v33  ;;  %945 = vrsqrt.f32 %v1327_v3  ;;  %v499_v43 = vsel %vm1348_vm7, %v1246_v9, %v495_v35 }
 0x16a   : > { %v667_v20 = vsel %vm256_vm0, %v641_v8, 0  ;;  %v452_v4 = vmul.f32 %v1323_v60, %v451_v30  ;;  %947 = vrsqrt.f32 %v1344_v39  ;;  %v509_v9 = vsel %vm1363_vm11, %v1234_v56, %v505_v63 }
 0x16b   : > { %v483_v19 = vmul.f32 0.5, %v482_v2  ;;  %669 = vmatpush.bf16.xpose.msra.mxu1 %v667_v20  ;;  %v462_v45 = vmul.f32 %v1330_v23, %v461_v15  ;;  %v578_v52 = vmul.f32 %v499_v43, %v1112_v11  ;;  %v628_v57 = vunpack.c.l.b16 %v596_v47  ;;  %v688_v11 = vld [vmem:[%s182_s8] sm:$0x1] }
 0x16c   : > { %v453_v48 = vmul.f32 0.5, %v452_v4  ;;  %v579_v58 = vmul.f32 %v509_v9, %v1116_v13  ;;  %v475_v59 = vmul.f32 %v1275_v36, %v474_v31  ;;  %vm457_vm2 = vweird.f32 %v1323_v60 }
 0x16d   : > { %v351_v38 = vpop.xlane.xlu0 %350  ;;  %v484_v41 = vsub.f32 1.5, %v483_v19  ;;  %v463_v56 = vmul.f32 0.5, %v462_v45  ;;  %v639_v2 = vpack.c.b16 %v629_v32, %v628_v57  ;;  %v594_v13 = vpack.c.bf16 %v578_v52, %v578_v52  ;;  %vm1416_vm5 = vmor %vm456_vm1, %vm457_vm2 }
 0x16e   : > { %v1352_v42 = vmax.f32 %v351_v38, 1e-24  ;;  %v1358_v46 = vpop.eup %943  ;;  %v454_v25 = vsub.f32 1.5, %v453_v48  ;;  %v595_v26 = vpack.c.bf16 %v579_v58, %v579_v58  ;;  %vm467_vm4 = vweird.f32 %v1330_v23 }
 0x16f   : > { %v1371_v1 = vpop.eup %945  ;;  %v485_v53 = vmul.f32 %v1304_v0, %v484_v41  ;;  %v431_v54 = vmul.f32 %v1358_v46, %v1321_v55  ;;  %v464_v7 = vsub.f32 1.5, %v463_v56  ;;  %v479_v30 = vsel %vm1387_vm14, %v1275_v36, %v475_v59  ;;  %vm1430_vm6 = vmor %vm466_vm3, %vm467_vm4 }
 0x170   : > { %949 = vrsqrt.f32 %v1352_v42  ;;  %v441_v24 = vmul.f32 %v1371_v1, %v1327_v3  ;;  %v1397_v8 = vpop.eup %947  ;;  %v661_v20 = vsel %vm256_vm0, %v639_v2, 0  ;;  %v626_v62 = vunpack.c.l.b16 %v594_v13 }
 0x171   : > { %v432_v6 = vmul.f32 %v1358_v46, %v431_v54  ;;  %v489_v49 = vsel %vm1393_vm15, %v1304_v0, %v485_v53  ;;  %v455_v0 = vmul.f32 %v1323_v60, %v454_v25  ;;  %v465_v38 = vmul.f32 %v1330_v23, %v464_v7 }
 0x172   : > { %v442_v27 = vmul.f32 %v1371_v1, %v441_v24  ;;  %v577_v29 = vmul.f32 %v489_v49, %v1178_v50  ;;  %v411_v36 = vmul.f32 %v1397_v8, %v1344_v39  ;;  %v627_v15 = vunpack.c.l.b16 %v595_v26 }
 0x173   : > { %670 = vmatpush.bf16.xpose.msra.mxu1 %v664_v51  ;;  %v433_v35 = vmul.f32 0.5, %v432_v6  ;;  %v576_v18 = vmul.f32 %v479_v30, %v1133_v22  ;;  %v459_v40 = vsel %vm1416_vm5, %v1323_v60, %v455_v0  ;;  %v469_v33 = vsel %vm1430_vm6, %v1330_v23, %v465_v38 }
 0x174   : > { %v443_v37 = vmul.f32 0.5, %v442_v27  ;;  %v638_v63 = vpack.c.b16 %v627_v15, %v626_v62  ;;  %v593_v4 = vpack.c.bf16 %v577_v29, %v577_v29  ;;  %v412_v22 = vmul.f32 %v1397_v8, %v411_v36 }
 0x175   : > { %v434_v44 = vsub.f32 1.5, %v433_v35  ;;  %v592_v43 = vpack.c.bf16 %v576_v18, %v576_v18  ;;  %v574_v5 = vmul.f32 %v459_v40, %v1131_v21  ;;  %vm437_vm7 = vweird.f32 %v1358_v46 }
 0x176   : > { %v1403_v16 = vpop.eup %949  ;;  %v444_v45 = vsub.f32 1.5, %v443_v37  ;;  %v658_v47 = vsel %vm256_vm0, %v638_v63, 0  ;;  %v625_v31 = vunpack.c.l.b16 %v593_v4  ;;  %v575_v9 = vmul.f32 %v469_v33, %v1143_v28 }
 0x177   : > { %v421_v19 = vmul.f32 %v1403_v16, %v1352_v42  ;;  %v435_v32 = vmul.f32 %v1358_v46, %v434_v44  ;;  %v413_v48 = vmul.f32 0.5, %v412_v22  ;;  %v624_v51 = vunpack.c.l.b16 %v592_v43 }
 0x178   : > { %v445_v23 = vmul.f32 %v1371_v1, %v444_v45  ;;  %vm447_vm9 = vweird.f32 %v1371_v1  ;;  %vm436_vm10 = vweird.f32 %v1321_v55  ;;  %v590_v21 = vpack.c.bf16 %v574_v5, %v574_v5 }
 0x179   : > { %v422_v41 = vmul.f32 %v1403_v16, %v421_v19  ;;  %vm438_vm11 = vmor %vm436_vm10, %vm437_vm7  ;;  %v637_v52 = vpack.c.b16 %v625_v31, %v624_v51  ;;  %v591_v54 = vpack.c.bf16 %v575_v9, %v575_v9  ;;  %vm416_vm12 = vweird.f32 %v1344_v39 }
 0x17a   : > { %v439_v56 = vsel %vm438_vm11, %v1358_v46, %v435_v32  ;;  %vm1453_vm13 = vmor %vm446_vm8, %vm447_vm9  ;;  %v414_v3 = vsub.f32 1.5, %v413_v48  ;;  %vm417_vm14 = vweird.f32 %v1397_v8  ;;  %v622_v55 = vunpack.c.l.b16 %v590_v21 }
 0x17b   : > { %671 = vmatpush.bf16.xpose.msra.mxu1 %v661_v20  ;;  %v423_v60 = vmul.f32 0.5, %v422_v41  ;;  %v449_v57 = vsel %vm1453_vm13, %v1371_v1, %v445_v23  ;;  %v655_v46 = vsel %vm256_vm0, %v637_v52, 0  ;;  %v572_v58 = vmul.f32 %v439_v56, %v1118_v14  ;;  %vm1475_vm2 = vmor %vm416_vm12, %vm417_vm14 }
 0x17c   : > { %v682_v59 = vlaneseq  ;;  %vm427_vm15 = vweird.f32 %v1403_v16  ;;  %v623_v25 = vunpack.c.l.b16 %v591_v54  ;;  %vm697_vm1 = vcmp.gt.f32.partialorder %v688_v11, 0.0 }
 0x17d   : > { %v424_v53 = vsub.f32 1.5, %v423_v60  ;;  %v573_v2 = vmul.f32 %v449_v57, %v1124_v17  ;;  %v1019_v49 = vmov 0   ;;  %v415_v7 = vmul.f32 %v1397_v8, %v414_v3 }
 0x17e   : > { %v683_v13 = vshrl.u32 %v682_v59, 7  ;;  %v685_v6 = vand.u32 127, %v682_v59  ;;  %v698_v1 = vsel %vm697_vm1, 1, %v1019_v49  ;;  %vm426_vm3 = vweird.f32 %v1352_v42 }
 0x17f   : > { %v425_v24 = vmul.f32 %v1403_v16, %v424_v53  ;;  %v699_v26 = vperm.slane %v698_v1, 0  ;;  %vm428_vm4 = vmor %vm426_vm3, %vm427_vm15  ;;  %v636_v27 = vpack.c.b16 %v623_v25, %v622_v55  ;;  %v588_v17 = vpack.c.bf16 %v572_v58, %v572_v58 }
 0x180   : > { %vm686_vm5 = vcmp.eq.s32.totalorder %v683_v13, %v685_v6  ;;  %vm695_vm6 = vcmp.ge.s32.totalorder %v685_v6, 8  ;;  %v589_v62 = vpack.c.bf16 %v573_v2, %v573_v2  ;;  %v419_v42 = vsel %vm1475_vm2, %v1397_v8, %v415_v7 }
 0x181   : > { %v429_v30 = vsel %vm428_vm4, %v1403_v16, %v425_v24  ;;  %v692_v0 = vsel %vm686_vm5, %v918_v61, 0.0  ;;  %vm1481_vm7 = vmor %vm686_vm5, %vm695_vm6  ;;  %vm1485_vm8 = vcmp.eq.s32.totalorder %v699_v26, 1  ;;  %v652_v16 = vsel %vm256_vm0, %v636_v27, 0 }
 0x182   : > { %693 = vadd.xlane.f32.xlu1 %v692_v0  ;;  %vm701_vm9 = vmor %vm1481_vm7, %vm1485_vm8  ;;  %v620_v29 = vunpack.c.l.b16 %v588_v17  ;;  %v571_v34 = vmul.f32 %v429_v30, %v1114_v12  ;;  %v621_v35 = vunpack.c.l.b16 %v589_v62  ;;  %v570_v19 = vmul.f32 %v419_v42, %v1110_v10 }
 0x183   : > { %672 = vmatpush.bf16.xpose.msra.mxu1 %v658_v47  ;;  %vm687_vm12 = vcmp.lt.s32.totalorder %v685_v6, 8 }
 0x184   : > { %v635_v38 = vpack.c.b16 %v621_v35, %v620_v29  ;;  %v587_v36 = vpack.c.bf16 %v571_v34, %v571_v34  ;;  %v586_v15 = vpack.c.bf16 %v570_v19, %v570_v19 }
 0x186   : > { %v649_v18 = vsel %vm256_vm0, %v635_v38, 0  ;;  %v619_v50 = vunpack.c.l.b16 %v587_v36  ;;  %v618_v37 = vunpack.c.l.b16 %v586_v15 }
 0x188   : > { %v634_v63 = vpack.c.b16 %v619_v50, %v618_v37 }
 0x18a   : > { %v646_v8 = vsel %vm256_vm0, %v634_v63, 0 }
 0x18b   : > { %673 = vmatpush.bf16.xpose.msra.mxu1 %v655_v46 }
 0x193   : > { %674 = vmatpush.bf16.xpose.msra.mxu1 %v652_v16 }
 0x19b   : > { %675 = vmatpush.bf16.xpose.msra.mxu1 %v649_v18 }
 0x1a3   : > { %676 = vmatpush.bf16.xpose.msra.mxu1 %v646_v8 }
 0x1aa   : > { %858 = vmatmul.msk.bf16.vlgmr.msra.gmra.mxu1 %vm256_vm0, %v586_v15 }
 0x1f5   : > { %v694_v12 = vpop.xlane.xlu1 %693 }
 0x1f6   : > { %vm702_vm10 = vcmp.gt.f32.partialorder %v694_v12, 0.0 }
 0x1f7   : > { %vm705_vm11 = vmor %vm701_vm9, %vm702_vm10 }
 0x227   : > { %v678_v10 = vpop.f32.mrf.mxu1 }
 0x228   : > { %v706_v4 = vsel %vm705_vm11, -1e+08, %v678_v10 }
 0x229   : > { %707 = vmax.xlane.f32.xlu2 %v706_v4 }
 0x22f   : > { %v680_v40 = vpop.f32.mrf.mxu1 }
 0x29c   : > { %v708_v44 = vpop.xlane.xlu2 %707 }
 0x29d   : > { %v709_v41 = vsub.f32 %v706_v4, %v708_v44 }
 0x29f   : > { %v710_v22 = vmul.f32 1.442695, %v709_v41 }
 0x2a1   : > { %951 = vpow2.f32 %v710_v22 }
 0x2a7   : > { %v952_v43 = vpop.eup %951 }
 0x2a8   : > { %v712_v33 = vsel %vm687_vm12, %v952_v43, 0.0 }
 0x2a9   : > { %713 = vadd.xlane.f32.xlu0 %v712_v33 }
 0x31c   : > { %v714_v45 = vpop.xlane.xlu0 %713 }
 0x31d   : > { %953 = vlog2.f32 %v714_v45 }
 0x323   : > { %v954_v5 = vpop.eup %953 }
 0x324   : > { %v716_v47 = vmul.f32 0.6931472, %v954_v5 }
 0x326   : > { %v717_v31 = vsub.f32 %v709_v41, %v716_v47 }
 0x328   : > { %718 = vst [vmem:[%s174_s24] sm:$0xff] %v717_v31 }
 0x329   : > { %982 = shalt.err (!%p979_p3)
}
 0x32a   : > { %878 = dma.vmem_to_hbm [thread:$0]  (%p1078_p5), %s733_s25, 128, %s735_s26, %s720_s27  }
 0x32b PF: > { %p884_p4 = scmp.ge.s32.totalorder %s1017_s15, 2  ;;  %s746_s7 = sand.u32 1, %s1005_s12  }
 0x32c   : > { %s747_s8 = scalar_lea.sflag [#allocation3], %s746_s7 }
 0x32d   : > { %p881_p7 = pnand %p884_p4, %p1082_p6 }
 0x32f   : > { %p882_p8 = pneg %p881_p7 }
 0x331   : > { %1000 = dma.done.wait (%p882_p8), %s747_s8, 128  }
 0x332   : > { %1002 = vsyncadd (%p882_p8), %s747_s8, 4294967168  ;;  %p13_p9 = scmp.ge.s32.totalorder %s1065_s18, 4   ;;  %s1575_s12 = smov %s1009_s13 }
 0x333   : > { %s1576_s13 = smov %s1013_s14  ;;  %s1577_s14 = smov %s1076_s21 }
 0x334   : > { %s1578_s15 = smov %s1065_s18  ;;  %15 = sbr.rel (!%p13_p9) target bundleno = 3 (0x3), region = 70 }
 0x339   :  { %753 = vsyncpa [#allocation3], 1 }
 0x33a   :  { %755 = vsyncpa [#allocation3 + $0x1], 1 }

</bundles_post_ra>
